<compile_context>
chip_gen: v7x
topology: tpu7x:2x2x1
jax: 0.10.0
libtpu: 0.0.40
codegen_flags: <defaults>
</compile_context>

<pallas_src>
import jax
import jax.numpy as jnp
from jax.experimental import pallas as pl
from jax.experimental.pallas import tpu as pltpu


_LANE = 128
_VMEM_LIMIT_BYTES = 32 << 20      # explicit scoped-VMEM limit (safe on v5e/v6e/v7x)
_VMEM_WORKSET_BUDGET = 16 << 20   # conservative sizing budget for tiles / no-grid path


def _workset_bytes_per_row(S, H, A):
    # x f32 + x bf16 + h f32 + h bf16 + logits/exp/probs f32 (+ small reductions)
    return 4 * S + 2 * S + 4 * H + 2 * H + 3 * 4 * A + 64


def policy_kernel(x_ref, w1_ref, b1_ref, w2_ref, b2_ref, out_ref):
    """One batch tile: softmax(relu(x @ W1 + b1) @ W2 + b2, axis=-1).

    W1/W2 arrive pre-cast to bf16 (no per-step re-cast of resident weights);
    MXU accumulates in f32; all VPU/EUP math is f32.  out_ref is either the
    natural (rows, A) block (no-grid path) or a lane-dense (rows*A/128, 128)
    slab (grid path) -- same row-major bytes, so one reshape covers both.
    """
    x = x_ref[...].astype(jnp.bfloat16)
    h = jnp.dot(x, w1_ref[...], preferred_element_type=jnp.float32) + b1_ref[...]
    h = jnp.maximum(h, 0.0)
    logits = jnp.dot(h.astype(jnp.bfloat16), w2_ref[...],
                     preferred_element_type=jnp.float32) + b2_ref[...]
    # Numerically-stable softmax; the max-subtraction also keeps any ragged
    # boundary-block garbage rows finite (those rows are never stored to
    # valid output positions).
    m = jnp.max(logits, axis=-1, keepdims=True)
    e = jnp.exp(logits - m)
    denom = jnp.sum(e, axis=-1, keepdims=True)
    probs = e / denom   # exact divide: rows sum to 1 at f32 precision
    out_ref[...] = probs.reshape(out_ref.shape).astype(out_ref.dtype)


def policy_network_forward(x, w1, b1, w2, b2, *, block_b=4096, single_block_rows=None):
    """x: (B, state_size) -> (B, action_size) f32 softmax probabilities."""
    B, S = x.shape
    H = w1.shape[1]
    A = w2.shape[1]

    # Weights are constant across a rollout: feed the MXU bf16 (cast is a
    # no-op if the caller already stores them as bf16, which is preferred).
    w1 = w1.astype(jnp.bfloat16)
    w2 = w2.astype(jnp.bfloat16)
    b1 = b1.astype(jnp.float32).reshape(1, H)
    b2 = b2.astype(jnp.float32).reshape(1, A)

    cost = pl.CostEstimate(
        flops=2 * B * (S * H + H * A),
        transcendentals=B * A,
        bytes_accessed=B * (S + A) * 4 + (S * H + H * A) * 2 + (H + A) * 4,
    )

    # How many rows fit the conservative VMEM working-set budget.
    vmem_rows = max(_LANE, _VMEM_WORKSET_BUDGET // _workset_bytes_per_row(S, H, A))
    if single_block_rows is None:
        single_block_rows = vmem_rows

    if B <= single_block_rows:
        # Moderate batch: one full VMEM-resident block per operand -- no grid,
        # no pipeline machinery, single-shot DMA at the HBM roofline.
        return pl.pallas_call(
            policy_kernel,
            out_shape=jax.ShapeDtypeStruct((B, A), jnp.float32),
            in_specs=[pl.BlockSpec(memory_space=pltpu.MemorySpace.VMEM)] * 5,
            out_specs=pl.BlockSpec(memory_space=pltpu.MemorySpace.VMEM),
            compiler_params=pltpu.CompilerParams(vmem_limit_bytes=_VMEM_LIMIT_BYTES),
            cost_estimate=cost,
        )(x, w1, b1, w2, b2)

    # Huge batch: stream x / out with large tiles, keep the tiny bf16 weights
    # VMEM-resident across the whole grid, shard the batch axis across
    # TensorCores (v7x), and write the output as a lane-dense slab.
    block_b = max(_LANE, (min(block_b, vmem_rows) // _LANE) * _LANE)  # multiple of 128
    nb = pl.cdiv(B, block_b)                    # ragged tail handled by boundary masking
    out_rows_per_tile = block_b * A // _LANE    # lane-dense slab rows per batch tile
    slab_rows = pl.cdiv(B * A, _LANE)

    slab = pl.pallas_call(
        policy_kernel,
        out_shape=jax.ShapeDtypeStruct((slab_rows, _LANE), jnp.float32),
        grid=(nb,),
        in_specs=[
            pl.BlockSpec((block_b, S), lambda i: (i, 0)),   # x: streamed over batch
            pl.BlockSpec((S, H), lambda i: (0, 0)),          # W1: VMEM-resident (bf16)
            pl.BlockSpec((1, H), lambda i: (0, 0)),          # b1: VMEM-resident
            pl.BlockSpec((H, A), lambda i: (0, 0)),          # W2: VMEM-resident (bf16)
            pl.BlockSpec((1, A), lambda i: (0, 0)),          # b2: VMEM-resident
        ],
        out_specs=pl.BlockSpec((out_rows_per_tile, _LANE), lambda i: (i, 0)),
        compiler_params=pltpu.CompilerParams(
            dimension_semantics=("parallel",),
            vmem_limit_bytes=_VMEM_LIMIT_BYTES),
        cost_estimate=cost,
    )(x, w1, b1, w2, b2)

    # Un-pack the lane-dense slab.  When B*A is a multiple of 128 this is a
    # free reshape (identical HBM layout); otherwise only the tiny output is
    # trimmed (no extra round trip of x).
    if slab_rows * _LANE == B * A:
        return slab.reshape(B, A)
    return slab.reshape(-1)[: B * A].reshape(B, A)


def init_params(key, state_size, action_size, hidden=128):
    """PyTorch nn.Linear-style U[-1/sqrt(fan_in), 1/sqrt(fan_in)] init.

    Weights are stored bf16 (the MXU dtype, constant across a rollout);
    biases stay f32.
    """
    k1, k2, k3, k4 = jax.random.split(key, 4)
    bound1 = 1.0 / jnp.sqrt(state_size)
    bound2 = 1.0 / jnp.sqrt(hidden)
    w1 = jax.random.uniform(k1, (state_size, hidden), jnp.float32, -bound1, bound1)
    b1 = jax.random.uniform(k2, (1, hidden), jnp.float32, -bound1, bound1)
    w2 = jax.random.uniform(k3, (hidden, action_size), jnp.float32, -bound2, bound2)
    b2 = jax.random.uniform(k4, (1, action_size), jnp.float32, -bound2, bound2)
    return w1.astype(jnp.bfloat16), b1, w2.astype(jnp.bfloat16), b2


def reference_forward(x, w1, b1, w2, b2):
    """Plain-JAX reference matching the kernel's bf16-MXU / f32-accumulate numerics."""
    h = jnp.dot(x.astype(jnp.bfloat16), w1.astype(jnp.bfloat16),
                preferred_element_type=jnp.float32) + b1.reshape(1, -1)
    h = jnp.maximum(h, 0.0)
    logits = jnp.dot(h.astype(jnp.bfloat16), w2.astype(jnp.bfloat16),
                     preferred_element_type=jnp.float32) + b2.reshape(1, -1)
    return jax.nn.softmax(logits, axis=-1)


if __name__ == "__main__":
    key = jax.random.PRNGKey(0)
    kx, kx2, kp = jax.random.split(key, 3)

    state_size, action_size, hidden = 32, 8, 128
    w1, b1, w2, b2 = init_params(kp, state_size, action_size, hidden)

    # --- small batch: exercises the single-block (no-grid, no-pipeline) path ---
    batch = 8
    x = jax.random.normal(kx, (batch, state_size), jnp.float32)
    probs = jax.block_until_ready(policy_network_forward(x, w1, b1, w2, b2))
    ref = reference_forward(x, w1, b1, w2, b2)
    assert probs.shape == (batch, action_size)
    assert jnp.allclose(probs, ref, atol=2e-3, rtol=2e-3)
    assert jnp.allclose(jnp.sum(probs, axis=-1), 1.0, atol=1e-4)  # exact divide -> tight

    # sanity-check against a pure-f32 reference (looser: bf16 MXU inputs)
    ref_f32 = jax.nn.softmax(
        jnp.maximum(x @ w1.astype(jnp.float32) + b1, 0.0) @ w2.astype(jnp.float32) + b2,
        axis=-1)
    assert jnp.allclose(probs, ref_f32, atol=2e-2, rtol=2e-2)

    # --- ragged batch, forced onto the tiled grid path: exercises resident
    #     bf16 weights, boundary-block masking (no wrapper pad / slice of x),
    #     the lane-dense output slab, and the "parallel" batch axis ---
    batch2 = 300  # not a multiple of block_b=128 -> ragged tail blocks
    x2 = jax.random.normal(kx2, (batch2, state_size), jnp.float32)
    probs2 = jax.block_until_ready(
        policy_network_forward(x2, w1, b1, w2, b2, block_b=128, single_block_rows=0))
    ref2 = reference_forward(x2, w1, b1, w2, b2)
    assert probs2.shape == (batch2, action_size)
    assert jnp.allclose(probs2, ref2, atol=2e-3, rtol=2e-3)
    assert jnp.allclose(jnp.sum(probs2, axis=-1), 1.0, atol=1e-4)

    print("KERNEL_OK")
</pallas_src>

<mosaic_0001>
module attributes {stable_mosaic.version = 11 : i64} {
  func.func @policy_kernel(%arg0: memref<8x32xf32, #tpu.memory_space<vmem>>, %arg1: memref<32x128xbf16, #tpu.memory_space<vmem>>, %arg2: memref<1x128xf32, #tpu.memory_space<vmem>>, %arg3: memref<128x8xbf16, #tpu.memory_space<vmem>>, %arg4: memref<1x8xf32, #tpu.memory_space<vmem>>, %arg5: memref<8x8xf32, #tpu.memory_space<vmem>>) attributes {dimension_semantics = [], scalar_prefetch = 0 : i64, scratch_operands = 0 : i64, tpu.core_type = #tpu.core_type<tc>} {
    %c0 = arith.constant 0 : index
    %c0_0 = arith.constant 0 : index
    %0 = vector.load %arg0[%c0, %c0_0] : memref<8x32xf32, #tpu.memory_space<vmem>>, vector<8x32xf32>
    %1 = arith.truncf %0 : vector<8x32xf32> to vector<8x32xbf16>
    %c0_1 = arith.constant 0 : index
    %c0_2 = arith.constant 0 : index
    %2 = vector.load %arg1[%c0_1, %c0_2] : memref<32x128xbf16, #tpu.memory_space<vmem>>, vector<32x128xbf16>
    %cst = arith.constant dense<0.000000e+00> : vector<8x128xf32>
    %3 = tpu.matmul %1, %2, %cst {dimension_numbers = #tpu.dot_dimension_numbers<[1], [0], [0], [1], [0, 0, 1, 1], [], []>} : vector<8x32xbf16>, vector<32x128xbf16>, vector<8x128xf32> -> vector<8x128xf32>
    %c0_3 = arith.constant 0 : index
    %c0_4 = arith.constant 0 : index
    %4 = vector.load %arg2[%c0_3, %c0_4] : memref<1x128xf32, #tpu.memory_space<vmem>>, vector<1x128xf32>
    %5 = vector.broadcast %4 : vector<1x128xf32> to vector<8x128xf32>
    %6 = arith.addf %3, %5 : vector<8x128xf32>
    %cst_5 = arith.constant 0.000000e+00 : f32
    %7 = vector.broadcast %cst_5 : f32 to vector<8x128xf32>
    %8 = arith.maximumf %6, %7 : vector<8x128xf32>
    %9 = arith.truncf %8 : vector<8x128xf32> to vector<8x128xbf16>
    %c0_6 = arith.constant 0 : index
    %c0_7 = arith.constant 0 : index
    %10 = vector.load %arg3[%c0_6, %c0_7] : memref<128x8xbf16, #tpu.memory_space<vmem>>, vector<128x8xbf16>
    %cst_8 = arith.constant dense<0.000000e+00> : vector<8x8xf32>
    %11 = tpu.matmul %9, %10, %cst_8 {dimension_numbers = #tpu.dot_dimension_numbers<[1], [0], [0], [1], [0, 0, 1, 1], [], []>} : vector<8x128xbf16>, vector<128x8xbf16>, vector<8x8xf32> -> vector<8x8xf32>
    %c0_9 = arith.constant 0 : index
    %c0_10 = arith.constant 0 : index
    %12 = vector.load %arg4[%c0_9, %c0_10] : memref<1x8xf32, #tpu.memory_space<vmem>>, vector<1x8xf32>
    %13 = vector.broadcast %12 : vector<1x8xf32> to vector<8x8xf32>
    %14 = arith.addf %11, %13 : vector<8x8xf32>
    %cst_11 = arith.constant dense<0xFF800000> : vector<8xf32>
    %15 = vector.multi_reduction <maximumf>, %14, %cst_11 [1] : vector<8x8xf32> to vector<8xf32>
    %16 = vector.shape_cast %15 : vector<8xf32> to vector<8x1xf32>
    %17 = vector.broadcast %16 : vector<8x1xf32> to vector<8x8xf32>
    %18 = arith.subf %14, %17 : vector<8x8xf32>
    %19 = math.exp %18 : vector<8x8xf32>
    %cst_12 = arith.constant dense<0.000000e+00> : vector<8xf32>
    %20 = vector.multi_reduction <add>, %19, %cst_12 [1] : vector<8x8xf32> to vector<8xf32>
    %21 = vector.shape_cast %20 : vector<8xf32> to vector<8x1xf32>
    %22 = vector.broadcast %21 : vector<8x1xf32> to vector<8x8xf32>
    %23 = arith.divf %19, %22 : vector<8x8xf32>
    %c0_13 = arith.constant 0 : index
    %c0_14 = arith.constant 0 : index
    %24 = vector.load %arg5[%c0_13, %c0_14] : memref<8x8xf32, #tpu.memory_space<vmem>>, vector<8x8xf32>
    tpu.vector_store %arg5[%c0_13, %c0_14], %23 {strides = array<i32>} : memref<8x8xf32, #tpu.memory_space<vmem>>, vector<8x8xf32>,
    return
  }
}

</mosaic_0001>

<bundles_post_ra>
// kernel: tpu_custom_call.1
= control target key start
LH: loop header
LB: loop body
LE: loop exit
PB: predicated region body
PF: predicated region fallthrough
CT: control target
= control target key end

     0   :  { %v325_v1 = vmov 0.0   ;;  %vm326_vm0 = vmmov 0   ;;  %vm47_vm1 = vcmask 261120   ;;  %s412_s0 = inlined_call_operand.vmem [shape: f32[8,32], index: 0, kind: input, shape index: {}]   ;;  %s413_s1 = inlined_call_operand.vmem [shape: bf16[32,128], index: 1, kind: input, shape index: {}]   ;;  %s414_s2 = inlined_call_operand.vmem [shape: f32[1,128], index: 2, kind: input, shape index: {}]   ;;  %s415_s3 = inlined_call_operand.vmem [shape: bf16[128,8], index: 3, kind: input, shape index: {}]   ;;  %s416_s4 = inlined_call_operand.vmem [shape: f32[1,8], index: 4, kind: input, shape index: {}]   ;;  %s417_s5 = inlined_call_operand.hbm [shape: f32[8,8], index: 5, kind: output, shape index: {}]  }
   0x1   :  { %v287_v0 = vld [vmem:[%s413_s1] sm:$0xff]   ;;  %256 = vmatprep.subr.bf16.mxu0 %v325_v1  ;;  %v288_v2 = vld [vmem:[%s413_s1 + $0x8] sm:$0xff]   ;;  %264 = vmatprep.subr.bf16.mxu1 %v325_v1  ;;  %v291_v7 = vld [vmem:[%s415_s3 + $0x10] sm:$0xff]  }
   0x2   :  { %257 = vmatpush3.bf16.msra.mxu0 %v287_v0  ;;  %260 = vmatprep.mubr.msk.bf16.mxu0 %vm326_vm0, %v325_v1  ;;  %v22_v3 = vld [vmem:[%s412_s0] sm:$0xff]  ;;  %v290_v6 = vld [vmem:[%s415_s3 + $0x8] sm:$0xff]  }
   0x3   :  { %258 = vmatprep.subr.bf16.mxu0 %v325_v1  ;;  %v289_v4 = vld [vmem:[%s415_s3] sm:$0xff]   ;;  %280 = vmatprep.mubr.msk.bf16.mxu1 %vm326_vm0, %v325_v1  ;;  %v23_v5 = vpack.c.bf16 %v22_v3, %v22_v3 }
   0x4   :  { %265 = vmatpush3.bf16.msra.mxu1 %v289_v4 }
   0x5   :  { %266 = vmatprep.subr.bf16.mxu1 %v325_v1 }
   0x6   :  { %259 = vmatpush3.bf16.msra.mxu0 %v288_v2 }
   0x8   :  { %267 = vmatpush3.bf16.msra.mxu1 %v290_v6 }
   0x9   :  { %261 = vmatmul.mubr.msk.bf16.vlgmr.msra.gmra.mrb[0].mxu0 %vm47_vm1, %v23_v5  ;;  %268 = vmatprep.subr.bf16.mxu1 %v325_v1 }
   0xa   :  { %10 = vsyncpa [#allocation3], 0  ;;  %v292_v8 = vld [vmem:[%s415_s3 + $0x18] sm:$0xff]   ;;  %v293_v9 = vld [vmem:[%s415_s3 + $0x20] sm:$0xff]   ;;  %vm204_vm2 = vcmask 64512  }
   0xb   :  { %v294_v10 = vld [vmem:[%s415_s3 + $0x28] sm:$0xff]   ;;  %v295_v11 = vld [vmem:[%s415_s3 + $0x30] sm:$0xff]   ;;  %v296_v12 = vld [vmem:[%s415_s3 + $0x38] sm:$0xff]  }
   0xc   :  { %269 = vmatpush3.bf16.msra.mxu1 %v291_v7  ;;  %v231_v13 = vld [vmem:[%s414_s2] ss:$0 sm:$0xff]  ;;  %s327_s2 = smov [#allocation2]  }
   0xd   :  { %270 = vmatprep.subr.bf16.mxu1 %v325_v1  ;;  %v235_v21 = vld [vmem:[%s416_s4] ss:$0 sm:$0xff]  ;;  %s223_s3 = sshll.u32 %s327_s2, 4  ;;  %s224_s3 = int_to_ptr.vmem [resolvable:$true] %s223_s3 }
   0xe   :  { %s301_s4 = scalar_lea.vmem %s224_s3, 128  ;;  %p306_p1 = scmp.lt.s32.totalorder %s224_s3, %s224_s3 }
   0xf   :  { %p302_p0 = scmp.ne.s32.totalorder %s224_s3, %s301_s4  ;;  %p307_p2 = scmp.lt.s32.totalorder %s301_s4, %s301_s4 }
  0x10   :  { %271 = vmatpush3.bf16.msra.mxu1 %v292_v8 }
  0x11   :  { %272 = vmatprep.subr.bf16.mxu1 %v325_v1  ;;  %p308_p3 = por %p307_p2, %p306_p1 }
  0x13   :  { %p309_p4 = pnand %p308_p3, %p302_p0 }
  0x14   :  { %273 = vmatpush3.bf16.msra.mxu1 %v293_v9 }
  0x15   :  { %274 = vmatprep.subr.bf16.mxu1 %v325_v1 }
  0x18   :  { %275 = vmatpush3.bf16.msra.mxu1 %v294_v10 }
  0x19   :  { %276 = vmatprep.subr.bf16.mxu1 %v325_v1 }
  0x1c   :  { %277 = vmatpush3.bf16.msra.mxu1 %v295_v11 }
  0x1d   :  { %278 = vmatprep.subr.bf16.mxu1 %v325_v1 }
  0x20   :  { %279 = vmatpush3.bf16.msra.mxu1 %v296_v12 }
  0xdc   :  { %v85_v14 = vpop.f32.mrb[0].mxu0 }
  0xdd   :  { %v86_v15 = vadd.f32 %v231_v13, %v85_v14  ;;  %v262_v16 = vpop.f32.mrb[1].mxu0 }
  0xde   :  { %v88_v17 = vpop.f32.mrb[2].mxu0 }
  0xdf   :  { %v91_v18 = vmax.f32 %v86_v15, 0.0  ;;  %v263_v19 = vpop.f32.mrb[3].mxu0 }
  0xe1   :  { %v92_v20 = vpack.c.bf16 %v91_v18, %v91_v18 }
  0xe3   :  { %281 = vmatmul.mubr.bf16.vlgmr.msra.gmra.mrb[0].mxu1 %v92_v20 }
 0x1b6   :  { %v198_v22 = vpop.f32.mrb[0].mxu1 }
 0x1b7   :  { %v199_v23 = vadd.f32 %v235_v21, %v198_v22  ;;  %v282_v24 = vpop.f32.mrb[1].mxu1 }
 0x1b8   :  { %v201_v25 = vpop.f32.mrb[2].mxu1 }
 0x1b9   :  { %v283_v26 = vpop.f32.mrb[3].mxu1  ;;  %v205_v27 = vsel %vm204_vm2, %v199_v23, -inf }
 0x1ba   :  { %206 = vmax.xlane.f32.xlu0 %v205_v27 }
 0x247   :  { %v207_v28 = vpop.xlane.xlu0 %206 }
 0x248   :  { %v208_v29 = vsub.f32 %v199_v23, %v207_v28 }
 0x24a   :  { %v209_v30 = vmul.f32 1.442695, %v208_v29 }
 0x24c   :  { %297 = vpow2.f32 %v209_v30 }
 0x256   :  { %v298_v31 = vpop.eup %297 }
 0x257   :  { %v211_v32 = vsel %vm204_vm2, %v298_v31, 0.0 }
 0x258   :  { %212 = vadd.xlane.f32.xlu0 %v211_v32 }
 0x2e5   :  { %v213_v33 = vpop.xlane.xlu0 %212 }
 0x2e6   :  { %299 = vrcp.f32 %v213_v33 }
 0x2f0   :  { %v300_v34 = vpop.eup %299 }
 0x2f1   :  { %v215_v35 = vmul.f32 %v300_v34, %v298_v31 }
 0x2f3   :  { %216 = vst.msk [vmem:[#allocation2] sm:$0xff] %vm204_vm2, %v215_v35 }
 0x2f4   :  { %312 = shalt.err (!%p309_p4)
}
 0x2f5   :  { %s313_s19 = scalar_lea.hbm %s417_s5, 128 }
 0x2f6   :  { %p314_p5 = scmp.ne.s32.totalorder %s417_s5, %s313_s19  ;;  %p317_p6 = scmp.lt.u32.totalorder %s313_s19, %s417_s5 }
 0x2f8   :  { %p319_p7 = pnand %p317_p6, %p314_p5 }
 0x2fa   :  { %322 = shalt.err (!%p319_p7)
}
 0x2fb   :  { %226 = dma.vmem_to_hbm [thread:$0]  %s224_s3, 128, %s417_s5, [#allocation3]  }
 0x2fc   :  { %323 = dma.done.wait [#allocation3], 128  }
 0x2fd   :  { %324 = vsyncadd [#allocation3], 4294967168 }
 0x2fe   :  { %230 = vsyncpa [#allocation3], 1 }

</bundles_post_ra>
